<compile_context>
chip_gen: v7x
topology: tpu7x:2x2x1
jax: 0.10.0
libtpu: 0.0.40
codegen_flags: <defaults>
</compile_context>

<pallas_src>
import functools

import jax
import jax.numpy as jnp
from jax import lax
from jax.experimental import pallas as pl
from jax.experimental.pallas import tpu as pltpu

LANES = 128
SUBLANES = 8
MAX_BLOCK_ROWS = 4096     # (4096,128) f32 = 2 MiB/operand/block
NUM_PARTIALS = 2          # leading 'parallel' axis (uses both TCs on v7x)


def _round_up(a, b):
    return pl.cdiv(a, b) * b


def _hdr_loss_kernel(x_ref, y_ref, out_ref, acc_ref, *, eps, inv_n,
                     block_rows, inner_blocks, last_block, n_rows):
    i = pl.program_id(0)
    k = pl.program_id(1)

    @pl.when(k == 0)
    def _():
        acc_ref[...] = jnp.zeros_like(acc_ref)

    x = x_ref[...].astype(jnp.float32)          # interleaved (re, im) pairs
    y = y_ref[...].astype(jnp.float32)

    d = x - y
    d2 = d * d                                  # per-component squared error
    x2 = x * x                                  # per-component squared input

    # Pair-sum with one XLU lane-rotation per operand:
    #   paired[j] = v[j] + v[j-1]  ->  at odd lanes j this is re^2 + im^2 of
    # complex element (row*64 + (j-1)//2).  Even lanes hold cross-pair
    # garbage; they are dropped once, from the accumulator, at the very end.
    err2 = d2 + pltpu.roll(d2, 1, axis=1)       # |error|^2   (odd lanes valid)
    mag2 = x2 + pltpu.roll(x2, 1, axis=1)       # |input|^2   (odd lanes valid)

    den2 = jnp.sqrt(mag2) + jnp.float32(eps)    # |input| + eps
    den2 = den2 * den2                          # (|input| + eps)^2
    loss = err2 / (den2 * den2)                 # |error|^2 / (|input|+eps)^4

    block_id = i * inner_blocks + k             # un-clamped logical block id

    # Hot path: interior blocks are fully valid -> no masking at all.
    @pl.when(block_id < last_block)
    def _():
        acc_ref[...] += loss.reshape(-1, SUBLANES, LANES).sum(axis=0)

    # Tail path: the final (possibly partial) block plus any clamped
    # duplicate steps.  Rows >= n_rows are removed by a select, so NaN/Inf in
    # the unfetched part of the buffer cannot leak into the sum.
    @pl.when(block_id >= last_block)
    def _():
        rows = block_id * block_rows + lax.broadcasted_iota(
            jnp.int32, loss.shape, 0)
        masked = jnp.where(rows < n_rows, loss, 0.0)
        acc_ref[...] += masked.reshape(-1, SUBLANES, LANES).sum(axis=0)

    @pl.when(k == pl.num_programs(1) - 1)
    def _():
        # Keep only the odd lanes (valid pair-sums); a single cross-lane
        # (XLU) reduce per partial, off the hot loop.
        lane = lax.broadcasted_iota(jnp.int32, (SUBLANES, LANES), 1)
        acc = jnp.where((lane & 1) == 1, acc_ref[...], 0.0)
        out_ref[...] = (jnp.sum(acc) * jnp.float32(inv_n)).reshape(1, 1, 1)


def _as_interleaved_flat(a):
    """Flatten to a real array whose elements alternate (re, im)."""
    if jnp.iscomplexobj(a):
        # TODO(synk): replace with a pure bitcast view (complex64 is already
        # stored interleaved) to avoid the real/imag gather copies.
        a = jnp.stack((jnp.real(a), jnp.imag(a)), axis=-1)
    else:
        assert a.shape[-1] == 2, (
            "real inputs must carry (real, imag) in the last dimension")
    return a.reshape(-1)


def adaptive_hdr_loss(inp, tgt, *, eps, hdr_ff_sigma=None, hdr_ff_factor=None):
    """Mean AdaptiveHDRLoss over all complex elements (reduce=True path)."""
    del hdr_ff_sigma, hdr_ff_factor             # unused by the v4 forward pass
    assert inp.shape == tgt.shape, "input and target must have the same shape"

    x = _as_interleaved_flat(inp)
    y = _as_interleaved_flat(tgt)
    n_complex = x.size // 2
    assert n_complex > 0

    # Only a sub-row tail (< 64 complex elements) ever needs padding.  Both
    # operands get the SAME constant, so error == 0 and the denominator is
    # >= 1 there: padded pairs contribute exactly 0 for any eps >= 0.
    rem = x.size % LANES
    if rem:
        # TODO(synk): fold this tiny tail into the kernel (manual ragged DMA)
        # to avoid the copy jnp.pad implies for ragged element counts.
        pad = LANES - rem
        x = jnp.pad(x, (0, pad), constant_values=1.0)
        y = jnp.pad(y, (0, pad), constant_values=1.0)

    n_rows = x.size // LANES
    x = x.reshape(n_rows, LANES)
    y = y.reshape(n_rows, LANES)

    block_rows = min(MAX_BLOCK_ROWS, _round_up(n_rows, SUBLANES))
    total_row_blocks = pl.cdiv(n_rows, block_rows)
    num_partials = min(NUM_PARTIALS, total_row_blocks)
    inner_blocks = pl.cdiv(total_row_blocks, num_partials)
    last_block = total_row_blocks - 1

    def block_map(i, k):
        # Clamp so that trailing grid steps past the last real block simply
        # re-read it; the kernel masks their contribution to zero.
        return (jnp.minimum(i * inner_blocks + k, last_block), 0)

    in_spec = pl.BlockSpec((block_rows, LANES), block_map)

    kernel = functools.partial(
        _hdr_loss_kernel,
        eps=float(eps),
        inv_n=1.0 / float(n_complex),
        block_rows=block_rows,
        inner_blocks=inner_blocks,
        last_block=last_block,
        n_rows=n_rows,
    )

    partials = pl.pallas_call(
        kernel,
        out_shape=jax.ShapeDtypeStruct((num_partials, 1, 1), jnp.float32),
        grid_spec=pltpu.PrefetchScalarGridSpec(
            num_scalar_prefetch=0,
            grid=(num_partials, inner_blocks),
            in_specs=[in_spec, in_spec],
            out_specs=pl.BlockSpec((1, 1, 1), lambda i, k: (i, 0, 0)),
            scratch_shapes=[pltpu.VMEM((SUBLANES, LANES), jnp.float32)],
        ),
        compiler_params=pltpu.CompilerParams(
            dimension_semantics=("parallel", "arbitrary"),
            vmem_limit_bytes=32 * 1024 * 1024,
        ),
    )(x, y)

    # Each partial is already scaled by 1/N; summing them gives the mean.
    return jnp.sum(partials)


class AdaptiveHDRLoss:
    """Pallas TPU port of the PyTorch AdaptiveHDRLoss module (v4 forward)."""

    def __init__(self, config):
        self.sigma = float(config["hdr_ff_sigma"])    # unused by v4 forward
        self.eps = float(config["eps"])
        self.factor = float(config["hdr_ff_factor"])  # unused by v4 forward

    def __call__(self, inp, tgt, reduce=True):
        if not reduce:
            # TODO(synk): the reference forward returns None when reduce=False
            # (no un-reduced path is defined); mirror that behaviour.
            return None
        return adaptive_hdr_loss(inp, tgt, eps=self.eps)


if __name__ == "__main__":
    key = jax.random.PRNGKey(0)
    kx, ky = jax.random.split(key)
    # (N, C, H, W, 2): last dim holds (real, imag), as torch.view_as_complex expects.
    shape = (2, 4, 16, 16, 2)
    x = jax.random.uniform(kx, shape, dtype=jnp.float32, minval=0.25, maxval=1.0)
    y = jax.random.uniform(ky, shape, dtype=jnp.float32, minval=0.25, maxval=1.0)

    config = {"hdr_ff_sigma": 1.0, "eps": 1e-3, "hdr_ff_factor": 0.5}
    loss_fn = AdaptiveHDRLoss(config)
    loss = jax.block_until_ready(loss_fn(x, y))

    # Pure-JAX reference mirroring the torch module.
    xc = jax.lax.complex(x[..., 0], x[..., 1])
    yc = jax.lax.complex(y[..., 0], y[..., 1])
    err = xc - yc
    ref = jnp.mean((-jnp.abs(err) / (jnp.abs(xc) + config["eps"]) ** 2) ** 2)

    assert jnp.allclose(loss, ref, rtol=1e-5, atol=1e-6), (loss, ref)
    print("KERNEL_OK")
</pallas_src>

<mosaic_0001>
module attributes {stable_mosaic.version = 11 : i64} {
  func.func @_hdr_loss_kernel(%arg0: i32, %arg1: i32, %arg2: memref<32x128xf32, #tpu.memory_space<vmem>>, %arg3: memref<32x128xf32, #tpu.memory_space<vmem>>, %arg4: memref<1x1x1xf32, #tpu.memory_space<vmem>>, %arg5: memref<8x128xf32, #tpu.memory_space<vmem>>) attributes {dimension_semantics = [#tpu.dimension_semantics<parallel>, #tpu.dimension_semantics<arbitrary>], iteration_bounds = array<i64: 1, 1>, scalar_prefetch = 0 : i64, scratch_operands = 1 : i64, tpu.core_type = #tpu.core_type<tc>, window_params = [{transform_indices = @transform_0, window_bounds = array<i64: 32, 128>}, {transform_indices = @transform_1, window_bounds = array<i64: 32, 128>}, {transform_indices = @transform_2, window_bounds = array<i64: 1, 1, 1>}]} {
    %c0_i32 = arith.constant 0 : i32
    %0 = arith.cmpi eq, %arg1, %c0_i32 : i32
    %1 = arith.extui %0 : i1 to i32
    %c0_i32_0 = arith.constant 0 : i32
    %2 = arith.cmpi ne, %1, %c0_i32_0 : i32
    scf.if %2 {
      %cst_12 = arith.constant 0.000000e+00 : f32
      %29 = vector.broadcast %cst_12 : f32 to vector<8x128xf32>
      %c0_13 = arith.constant 0 : index
      %c0_14 = arith.constant 0 : index
      %30 = vector.load %arg5[%c0_13, %c0_14] : memref<8x128xf32, #tpu.memory_space<vmem>>, vector<8x128xf32>
      tpu.vector_store %arg5[%c0_13, %c0_14], %29 {strides = array<i32>} : memref<8x128xf32, #tpu.memory_space<vmem>>, vector<8x128xf32>,
    } else {
    }
    %c0 = arith.constant 0 : index
    %c0_1 = arith.constant 0 : index
    %3 = vector.load %arg2[%c0, %c0_1] : memref<32x128xf32, #tpu.memory_space<vmem>>, vector<32x128xf32>
    %c0_2 = arith.constant 0 : index
    %c0_3 = arith.constant 0 : index
    %4 = vector.load %arg3[%c0_2, %c0_3] : memref<32x128xf32, #tpu.memory_space<vmem>>, vector<32x128xf32>
    %5 = arith.subf %3, %4 : vector<32x128xf32>
    %6 = arith.mulf %5, %5 : vector<32x128xf32>
    %7 = arith.mulf %3, %3 : vector<32x128xf32>
    %c1_i32 = arith.constant 1 : i32
    %8 = tpu.dynamic_rotate %6 by %c1_i32 dim 1 : vector<32x128xf32>, i32 -> vector<32x128xf32>
    %9 = arith.addf %6, %8 : vector<32x128xf32>
    %c1_i32_4 = arith.constant 1 : i32
    %10 = tpu.dynamic_rotate %7 by %c1_i32_4 dim 1 : vector<32x128xf32>, i32 -> vector<32x128xf32>
    %11 = arith.addf %7, %10 : vector<32x128xf32>
    %12 = math.sqrt %11 : vector<32x128xf32>
    %cst = arith.constant 1.000000e-03 : f32
    %13 = vector.broadcast %cst : f32 to vector<32x128xf32>
    %14 = arith.addf %12, %13 : vector<32x128xf32>
    %15 = arith.mulf %14, %14 : vector<32x128xf32>
    %16 = arith.mulf %15, %15 : vector<32x128xf32>
    %17 = arith.divf %9, %16 : vector<32x128xf32>
    %c1_i32_5 = arith.constant 1 : i32
    %18 = arith.muli %arg0, %c1_i32_5 : i32
    %19 = arith.addi %18, %arg1 : i32
    %c0_i32_6 = arith.constant 0 : i32
    %20 = arith.cmpi slt, %19, %c0_i32_6 : i32
    %21 = arith.extui %20 : i1 to i32
    %c0_i32_7 = arith.constant 0 : i32
    %22 = arith.cmpi ne, %21, %c0_i32_7 : i32
    scf.if %22 {
      %c0_12 = arith.constant 0 : index
      %c0_13 = arith.constant 0 : index
      %29 = vector.load %arg5[%c0_12, %c0_13] : memref<8x128xf32, #tpu.memory_space<vmem>>, vector<8x128xf32>
      %30 = vector.shape_cast %17 : vector<32x128xf32> to vector<4x8x128xf32>
      %cst_14 = arith.constant dense<0.000000e+00> : vector<8x128xf32>
      %31 = vector.multi_reduction <add>, %30, %cst_14 [0] : vector<4x8x128xf32> to vector<8x128xf32>
      %32 = arith.addf %29, %31 : vector<8x128xf32>
      %c0_15 = arith.constant 0 : index
      %c0_16 = arith.constant 0 : index
      %33 = vector.load %arg5[%c0_15, %c0_16] : memref<8x128xf32, #tpu.memory_space<vmem>>, vector<8x128xf32>
      tpu.vector_store %arg5[%c0_15, %c0_16], %32 {strides = array<i32>} : memref<8x128xf32, #tpu.memory_space<vmem>>, vector<8x128xf32>,
    } else {
    }
    %c0_i32_8 = arith.constant 0 : i32
    %23 = arith.cmpi sge, %19, %c0_i32_8 : i32
    %24 = arith.extui %23 : i1 to i32
    %c0_i32_9 = arith.constant 0 : i32
    %25 = arith.cmpi ne, %24, %c0_i32_9 : i32
    scf.if %25 {
      %c32_i32 = arith.constant 32 : i32
      %29 = arith.muli %19, %c32_i32 : i32
      %30 = tpu.iota {dimensions = array<i32: 0>} : vector<32x128xi32>
      %31 = vector.broadcast %29 : i32 to vector<32x128xi32>
      %32 = arith.addi %31, %30 : vector<32x128xi32>
      %c32_i32_12 = arith.constant 32 : i32
      %33 = vector.broadcast %c32_i32_12 : i32 to vector<32x128xi32>
      %34 = arith.cmpi slt, %32, %33 : vector<32x128xi32>
      %cst_13 = arith.constant 0.000000e+00 : f32
      %35 = vector.broadcast %cst_13 : f32 to vector<32x128xf32>
      %36 = arith.select %34, %17, %35 : vector<32x128xi1>, vector<32x128xf32>
      %c0_14 = arith.constant 0 : index
      %c0_15 = arith.constant 0 : index
      %37 = vector.load %arg5[%c0_14, %c0_15] : memref<8x128xf32, #tpu.memory_space<vmem>>, vector<8x128xf32>
      %38 = vector.shape_cast %36 : vector<32x128xf32> to vector<4x8x128xf32>
      %cst_16 = arith.constant dense<0.000000e+00> : vector<8x128xf32>
      %39 = vector.multi_reduction <add>, %38, %cst_16 [0] : vector<4x8x128xf32> to vector<8x128xf32>
      %40 = arith.addf %37, %39 : vector<8x128xf32>
      %c0_17 = arith.constant 0 : index
      %c0_18 = arith.constant 0 : index
      %41 = vector.load %arg5[%c0_17, %c0_18] : memref<8x128xf32, #tpu.memory_space<vmem>>, vector<8x128xf32>
      tpu.vector_store %arg5[%c0_17, %c0_18], %40 {strides = array<i32>} : memref<8x128xf32, #tpu.memory_space<vmem>>, vector<8x128xf32>,
    } else {
    }
    %c0_i32_10 = arith.constant 0 : i32
    %26 = arith.cmpi eq, %arg1, %c0_i32_10 : i32
    %27 = arith.extui %26 : i1 to i32
    %c0_i32_11 = arith.constant 0 : i32
    %28 = arith.cmpi ne, %27, %c0_i32_11 : i32
    scf.if %28 {
      %29 = tpu.iota {dimensions = array<i32: 1>} : vector<8x128xi32>
      %c1_i32_12 = arith.constant 1 : i32
      %30 = vector.broadcast %c1_i32_12 : i32 to vector<8x128xi32>
      %31 = arith.andi %29, %30 : vector<8x128xi32>
      %c1_i32_13 = arith.constant 1 : i32
      %32 = vector.broadcast %c1_i32_13 : i32 to vector<8x128xi32>
      %33 = arith.cmpi eq, %31, %32 : vector<8x128xi32>
      %c0_14 = arith.constant 0 : index
      %c0_15 = arith.constant 0 : index
      %34 = vector.load %arg5[%c0_14, %c0_15] : memref<8x128xf32, #tpu.memory_space<vmem>>, vector<8x128xf32>
      %cst_16 = arith.constant 0.000000e+00 : f32
      %35 = vector.broadcast %cst_16 : f32 to vector<8x128xf32>
      %36 = arith.select %33, %34, %35 : vector<8x128xi1>, vector<8x128xf32>
      %37 = vector.shape_cast %36 : vector<8x128xf32> to vector<1x8x128xf32>
      %cst_17 = arith.constant dense<0.000000e+00> : vector<1xf32>
      %38 = vector.multi_reduction <add>, %37, %cst_17 [1, 2] : vector<1x8x128xf32> to vector<1xf32>
      %39 = vector.shape_cast %38 : vector<1xf32> to vector<1x1x1xf32>
      %40 = vector.extract %39[0, 0, 0] : f32 from vector<1x1x1xf32>
      %cst_18 = arith.constant 4.8828125E-4 : f32
      %41 = arith.mulf %40, %cst_18 : f32
      %42 = vector.broadcast %41 : f32 to vector<1x1x1xf32>
      %c0_19 = arith.constant 0 : index
      %c0_20 = arith.constant 0 : index
      %c0_21 = arith.constant 0 : index
      %43 = vector.load %arg4[%c0_19, %c0_20, %c0_21] : memref<1x1x1xf32, #tpu.memory_space<vmem>>, vector<1x1x1xf32>
      tpu.vector_store %arg4[%c0_19, %c0_20, %c0_21], %42 {strides = array<i32>} : memref<1x1x1xf32, #tpu.memory_space<vmem>>, vector<1x1x1xf32>,
    } else {
    }
    return
  }
  func.func @transform_0(%arg0: i32, %arg1: i32) -> (i32, i32) {
    %c1_i32 = arith.constant 1 : i32
    %0 = arith.muli %arg0, %c1_i32 : i32
    %1 = arith.addi %0, %arg1 : i32
    %c0_i32 = arith.constant 0 : i32
    %2 = arith.minsi %1, %c0_i32 : i32
    %c0_i32_0 = arith.constant 0 : i32
    %c0_i32_1 = arith.constant 0 : i32
    return %2, %c0_i32_0 : i32, i32
  }
  func.func @transform_1(%arg0: i32, %arg1: i32) -> (i32, i32) {
    %c1_i32 = arith.constant 1 : i32
    %0 = arith.muli %arg0, %c1_i32 : i32
    %1 = arith.addi %0, %arg1 : i32
    %c0_i32 = arith.constant 0 : i32
    %2 = arith.minsi %1, %c0_i32 : i32
    %c0_i32_0 = arith.constant 0 : i32
    %c0_i32_1 = arith.constant 0 : i32
    return %2, %c0_i32_0 : i32, i32
  }
  func.func @transform_2(%arg0: i32, %arg1: i32) -> (i32, i32, i32) {
    %c0_i32 = arith.constant 0 : i32
    %c0_i32_0 = arith.constant 0 : i32
    %c0_i32_1 = arith.constant 0 : i32
    return %arg0, %c0_i32, %c0_i32_0 : i32, i32, i32
  }
}

</mosaic_0001>

<bundles_post_ra>
// kernel: tpu_custom_call.1
= control target key start
LH: loop header
LB: loop body
LE: loop exit
PB: predicated region body
PF: predicated region fallthrough
CT: control target
= control target key end

     0   :  { %7 = vsyncpa [#allocation4], 0  ;;  %s408_s0 = inlined_call_operand.hbm [shape: f32[32,128], index: 0, kind: input, shape index: {}]   ;;  %s409_s1 = inlined_call_operand.hbm [shape: f32[32,128], index: 1, kind: input, shape index: {}]   ;;  %s410_s2 = inlined_call_operand.hbm [shape: f32[1,1,1], index: 2, kind: output, shape index: {}]  }
   0x1   :  { %8 = vsyncpa [#allocation7], 0 }
   0x2   :  { %9 = vsyncpa [#allocation5], 0  ;;  %s335_s9 = smov [#allocation3]   ;;  %s263_s13 = scalar_lea.hbm %s408_s0, 512 }
   0x3   :  { %s21_s10 = sshll.u32 %s335_s9, 4  ;;  %p264_p0 = scmp.ne.s32.totalorder %s408_s0, %s263_s13  ;;  %s22_s10 = int_to_ptr.vmem [resolvable:$true] %s21_s10 }
   0x4   :  { %p267_p1 = scmp.lt.u32.totalorder %s263_s13, %s408_s0 }
   0x6   :  { %p269_p2 = pnand %p267_p1, %p264_p0 }
   0x8   :  { %272 = shalt.err (!%p269_p2)
}
   0x9   :  { %s273_s18 = scalar_lea.vmem %s22_s10, 512  ;;  %p278_p4 = scmp.lt.s32.totalorder %s22_s10, %s22_s10 }
   0xa   :  { %p274_p3 = scmp.ne.s32.totalorder %s22_s10, %s273_s18  ;;  %p279_p5 = scmp.lt.s32.totalorder %s273_s18, %s273_s18 }
   0xc   :  { %p280_p6 = por %p279_p5, %p278_p4 }
   0xe   :  { %p281_p7 = pnand %p280_p6, %p274_p3 }
  0x10   :  { %284 = shalt.err (!%p281_p7)
}
  0x11   :  { %s336_s19 = smov 128   ;;  %s337_s20 = smov 8  }
  0x12   :  { %27 = dma.hbm_to_vmem [thread:$0]  %s408_s0, 512, %s22_s10, [#allocation4], %s336_s19, %s336_s19, %s337_s20  }
  0x13   :  { %s338_s23 = smov [#allocation6]   ;;  %s285_s27 = scalar_lea.hbm %s409_s1, 512 }
  0x14   :  { %s39_s24 = sshll.u32 %s338_s23, 4  ;;  %p286_p8 = scmp.ne.s32.totalorder %s409_s1, %s285_s27  ;;  %s40_s24 = int_to_ptr.vmem [resolvable:$true] %s39_s24 }
  0x15   :  { %p289_p9 = scmp.lt.u32.totalorder %s285_s27, %s409_s1 }
  0x17   :  { %p291_p10 = pnand %p289_p9, %p286_p8 }
  0x19   :  { %294 = shalt.err (!%p291_p10)
}
  0x1a   :  { %s295_s4 = scalar_lea.vmem %s40_s24, 512  ;;  %p300_p12 = scmp.lt.s32.totalorder %s40_s24, %s40_s24 }
  0x1b   :  { %p296_p11 = scmp.ne.s32.totalorder %s40_s24, %s295_s4  ;;  %p301_p13 = scmp.lt.s32.totalorder %s295_s4, %s295_s4 }
  0x1d   :  { %p302_p0 = por %p301_p13, %p300_p12 }
  0x1f   :  { %p303_p1 = pnand %p302_p0, %p296_p11 }
  0x21   :  { %306 = shalt.err (!%p303_p1)
}
  0x22   :  { %45 = dma.hbm_to_vmem [thread:$0]  %s409_s1, 512, %s40_s24, [#allocation7], %s336_s19, %s336_s19, %s337_s20  }
  0x23   :  { %329 = dma.done.wait [#allocation4], 512  }
  0x24   :  { %330 = vsyncadd [#allocation4], 4294966784 }
  0x25   :  { %331 = dma.done.wait [#allocation7], 512  }
  0x26   :  { %332 = vsyncadd [#allocation7], 4294966784  ;;  %v67_v0 = vld [vmem:[#allocation3 + $0x10] sm:$0xff]  ;;  %v65_v1 = vld [vmem:[#allocation3] sm:$0xff]  ;;  %s339_s6 = smov 1   ;;  %v200_v62 = vlaneseq  ;;  %s340_s1 = smov [#allocation8]  }
  0x27   :  { %v83_v2 = vmul.f32 %v67_v0, %v67_v0  ;;  %v69_v3 = vld [vmem:[#allocation6] sm:$0xff]  ;;  %v81_v4 = vmul.f32 %v65_v1, %v65_v1  ;;  %v68_v5 = vld [vmem:[#allocation3 + $0x18] sm:$0xff]  ;;  %v66_v6 = vld [vmem:[#allocation3 + $0x8] sm:$0xff]  ;;  %s225_s7 = sshll.u32 %s340_s1, 4  ;;  %vm217_vm9 = vcmask 0   ;;  %s226_s7 = int_to_ptr.vmem [resolvable:$true] %s225_s7 }
  0x28   :  { %v73_v7 = vsub.f32 %v65_v1, %v69_v3  ;;  %v70_v8 = vld [vmem:[#allocation6 + $0x8] sm:$0xff]  ;;  %v71_v9 = vld [vmem:[#allocation6 + $0x10] sm:$0xff]  ;;  %v84_v10 = vmul.f32 %v68_v5, %v68_v5  ;;  %v82_v11 = vmul.f32 %v66_v6, %v66_v6  ;;  %v72_v13 = vld [vmem:[#allocation6 + $0x18] sm:$0xff]  ;;  %s307_s10 = scalar_lea.vmem %s226_s7, 16  ;;  %s311_s11 = scalar_lea.vmem %s226_s7, 32 }
  0x29   :  { %101 = vrot.lane.b32.xlu1 %v83_v2, %s339_s6  ;;  %97 = vrot.lane.b32.xlu0 %v81_v4, %s339_s6  ;;  %v74_v12 = vsub.f32 %v66_v6, %v70_v8  ;;  %v75_v14 = vsub.f32 %v67_v0, %v71_v9  ;;  %v76_v17 = vsub.f32 %v68_v5, %v72_v13  ;;  %p308_p2 = scmp.ne.s32.totalorder %s226_s7, %s307_s10  ;;  %p312_p3 = scmp.lt.s32.totalorder %s226_s7, %s226_s7 }
  0x2a   :  { %v380_v15 = vmul.f32 %v73_v7, %v73_v7  ;;  %p313_p4 = scmp.lt.s32.totalorder %s311_s11, %s307_s10 }
  0x2b   :  { %v382_v16 = vmul.f32 %v74_v12, %v74_v12  ;;  %v386_v18 = vmul.f32 %v75_v14, %v75_v14  ;;  %v388_v19 = vmul.f32 %v76_v17, %v76_v17 }
  0x2c   :  { %p314_p5 = por %p313_p4, %p312_p3 }
  0x2d   :  { %103 = vrot.lane.b32.xlu1 %v84_v10, %s339_s6  ;;  %99 = vrot.lane.b32.xlu0 %v82_v11, %s339_s6 }
  0x2e   :  { %p315_p6 = pnand %p314_p5, %p308_p2 }
  0x31   :  { %85 = vrot.lane.b32.xlu0 %v380_v15, %s339_s6  ;;  %87 = vrot.lane.b32.xlu1 %v382_v16, %s339_s6 }
  0x35   :  { %89 = vrot.lane.b32.xlu0 %v386_v18, %s339_s6  ;;  %91 = vrot.lane.b32.xlu1 %v388_v19, %s339_s6 }
  0x9b   :  { %v102_v20 = vpop.permute.xlu1 %101  ;;  %v98_v21 = vpop.permute.xlu0 %97 }
  0x9c   :  { %v107_v22 = vadd.f32 %v102_v20, %v83_v2  ;;  %v105_v23 = vadd.f32 %v98_v21, %v81_v4  ;;  %v201_v4 = vand.u32 127, %v200_v62 }
  0x9e   :  { %247 = vrsqrt.f32 %v107_v22  ;;  %vm125_vm0 = vcmp.eq.f32.partialorder %v107_v22, inf  ;;  %v128_v31 = vand.u32 2147483648, %v107_v22  ;;  %vm111_vm1 = vcmp.eq.f32.partialorder %v105_v23, inf }
  0x9f   :  { %249 = vrsqrt.f32 %v105_v23  ;;  %v104_v24 = vpop.permute.xlu1 %103  ;;  %v100_v25 = vpop.permute.xlu0 %99  ;;  %v114_v33 = vand.u32 2147483648, %v105_v23  ;;  %vm127_vm2 = vcmp.eq.f32.partialorder %v107_v22, 0.0  ;;  %vm113_vm3 = vcmp.eq.f32.partialorder %v105_v23, 0.0 }
  0xa0   :  { %v108_v26 = vadd.f32 %v104_v24, %v84_v10  ;;  %v106_v27 = vadd.f32 %v100_v25, %v82_v11  ;;  %v202_v12 = vand.u32 1, %v201_v4 }
  0xa2   :  { %251 = vrsqrt.f32 %v108_v26  ;;  %vm132_vm4 = vcmp.eq.f32.partialorder %v108_v26, inf  ;;  %v135_v42 = vand.u32 2147483648, %v108_v26  ;;  %vm118_vm5 = vcmp.eq.f32.partialorder %v106_v27, inf }
  0xa3   :  { %253 = vrsqrt.f32 %v106_v27  ;;  %v121_v45 = vand.u32 2147483648, %v106_v27  ;;  %vm134_vm6 = vcmp.eq.f32.partialorder %v108_v26, 0.0  ;;  %vm120_vm7 = vcmp.eq.f32.partialorder %v106_v27, 0.0  ;;  %v86_v60 = vpop.permute.xlu0 %85  ;;  %v88_v61 = vpop.permute.xlu1 %87 }
  0xa4   :  { %v93_v0 = vadd.f32 %v86_v60, %v380_v15  ;;  %v94_v1 = vadd.f32 %v88_v61, %v382_v16  ;;  %vm203_vm8 = vcmp.eq.s32.totalorder %v202_v12, 1 }
  0xa7   :  { %v90_v63 = vpop.permute.xlu0 %89  ;;  %v92_v3 = vpop.permute.xlu1 %91 }
  0xa8   :  { %v248_v28 = vpop.eup %247  ;;  %v95_v6 = vadd.f32 %v90_v63, %v386_v18  ;;  %v96_v10 = vadd.f32 %v92_v3, %v388_v19 }
  0xa9   :  { %v250_v29 = vpop.eup %249  ;;  %v124_v30 = vmul.f32 %v248_v28, %v107_v22 }
  0xaa   :  { %v110_v32 = vmul.f32 %v250_v29, %v105_v23 }
  0xab   :  { %v126_v34 = vsel %vm125_vm0, %v107_v22, %v124_v30 }
  0xac   :  { %v252_v35 = vpop.eup %251  ;;  %v112_v36 = vsel %vm111_vm1, %v105_v23, %v110_v32  ;;  %v129_v37 = vsel %vm127_vm2, %v128_v31, %v126_v34 }
  0xad   :  { %v254_v38 = vpop.eup %253  ;;  %v131_v39 = vmul.f32 %v252_v35, %v108_v26  ;;  %v115_v40 = vsel %vm113_vm3, %v114_v33, %v112_v36  ;;  %v139_v41 = vadd.f32 0.001, %v129_v37 }
  0xae   :  { %v117_v43 = vmul.f32 %v254_v38, %v106_v27  ;;  %v137_v44 = vadd.f32 0.001, %v115_v40 }
  0xaf   :  { %v143_v46 = vmul.f32 %v139_v41, %v139_v41  ;;  %v133_v47 = vsel %vm132_vm4, %v108_v26, %v131_v39 }
  0xb0   :  { %v141_v48 = vmul.f32 %v137_v44, %v137_v44  ;;  %v119_v49 = vsel %vm118_vm5, %v106_v27, %v117_v43  ;;  %v136_v50 = vsel %vm134_vm6, %v135_v42, %v133_v47 }
  0xb1   :  { %v122_v51 = vsel %vm120_vm7, %v121_v45, %v119_v49  ;;  %v140_v52 = vadd.f32 0.001, %v136_v50  ;;  %v147_v55 = vmul.f32 %v143_v46, %v143_v46 }
  0xb2   :  { %v145_v53 = vmul.f32 %v141_v48, %v141_v48  ;;  %v138_v54 = vadd.f32 0.001, %v122_v51 }
  0xb3   :  { %v144_v56 = vmul.f32 %v140_v52, %v140_v52 }
  0xb4   :  { %v142_v57 = vmul.f32 %v138_v54, %v138_v54  ;;  %255 = vrcp.f32 %v145_v53 }
  0xb5   :  { %v148_v59 = vmul.f32 %v144_v56, %v144_v56  ;;  %257 = vrcp.f32 %v147_v55 }
  0xb6   :  { %v146_v58 = vmul.f32 %v142_v57, %v142_v57 }
  0xb8   :  { %259 = vrcp.f32 %v146_v58 }
  0xb9   :  { %261 = vrcp.f32 %v148_v59 }
  0xbe   :  { %v256_v2 = vpop.eup %255 }
  0xbf   :  { %v258_v5 = vpop.eup %257  ;;  %v150_v8 = vmul.f32 %v256_v2, %v93_v0 }
  0xc0   :  { %v154_v14 = vmul.f32 %v258_v5, %v95_v6 }
  0xc2   :  { %v260_v7 = vpop.eup %259 }
  0xc3   :  { %v152_v9 = vmul.f32 %v260_v7, %v94_v1  ;;  %v262_v11 = vpop.eup %261 }
  0xc4   :  { %v156_v17 = vmul.f32 %v262_v11, %v96_v10 }
  0xc5   :  { %v192_v13 = vadd.f32 %v152_v9, %v150_v8 }
  0xc7   :  { %v193_v20 = vadd.f32 %v192_v13, %v154_v14 }
  0xc9   :  { %v194_v15 = vadd.f32 %v193_v20, %v156_v17 }
  0xcb   :  { %v205_v16 = vsel %vm203_vm8, %v194_v15, 0.0 }
  0xcc   :  { %206 = vadd.xlane.f32.xlu0 %v205_v16 }
 0x159   :  { %v207_v21 = vpop.xlane.xlu0 %206 }
 0x15a   :  { %v208_v22 = vrot.slane %v207_v21, 4 }
 0x15c   :  { %v209_v23 = vadd.f32 %v208_v22, %v207_v21 }
 0x15e   :  { %v210_v24 = vrot.slane %v209_v23, 2 }
 0x160   :  { %v211_v18 = vadd.f32 %v210_v24, %v209_v23 }
 0x162   :  { %v212_v25 = vrot.slane %v211_v18, 1 }
 0x164   :  { %v213_v26 = vadd.f32 %v212_v25, %v211_v18 }
 0x166   :  { %239 = vpush %v213_v26 }
 0x197   :  { %s240_s8 = spop %239 }
 0x198   :  { %s215_s9 = smul.f32 0.00048828125, %s240_s8 }
 0x19a   :  { %v216_v19 = vstv %s215_s9 }
 0x19b   :  { %218 = vst.msk [vmem:[#allocation8] sm:$0x1] %vm217_vm9, %v216_v19 }
 0x19c   :  { %318 = shalt.err (!%p315_p6)
}
 0x19d   :  { %s319_s14 = scalar_lea.hbm %s410_s2, 16 }
 0x19e   :  { %p320_p7 = scmp.ne.s32.totalorder %s410_s2, %s319_s14  ;;  %p323_p8 = scmp.lt.u32.totalorder %s319_s14, %s410_s2 }
 0x1a0   :  { %p325_p9 = pnand %p323_p8, %p320_p7 }
 0x1a2   :  { %328 = shalt.err (!%p325_p9)
}
 0x1a3   :  { %228 = dma.vmem_to_hbm [thread:$0]  %s226_s7, 16, %s410_s2, [#allocation5]  }
 0x1a4   :  { %333 = dma.done.wait [#allocation5], 16  }
 0x1a5   :  { %334 = vsyncadd [#allocation5], 4294967280 }
 0x1a6   :  { %232 = vsyncpa [#allocation4], 1 }
 0x1a7   :  { %233 = vsyncpa [#allocation7], 1 }
 0x1a8   :  { %234 = vsyncpa [#allocation5], 1 }

</bundles_post_ra>
